<compile_context>
chip_gen: v7x
topology: tpu7x:2x2x1
jax: 0.10.0
libtpu: 0.0.40
codegen_flags: <defaults>
</compile_context>

<pallas_src>
import numpy as np
import jax
import jax.numpy as jnp
from jax.experimental import pallas as pl
from jax.experimental.pallas import tpu as pltpu


def _embed_kernel(x_ref, g_ref, tbl_ref, o_ref):
    """One row-tile of the embedding.

    x_ref:   (tb, C)      input rows
    g_ref:   (C, out_c)   0/1 one-hot replication matrix (lane p*C+c <- x[:, c])
    tbl_ref: (3, out_c)   row 0: per-lane frequency (1.0 on passthrough lanes)
                          row 1: 1.0 on sin lanes, row 2: 1.0 on cos lanes
    o_ref:   (tb, out_c)  output tile
    """
    x = x_ref[...]                                            # (tb, C)
    # Lane replication on the MXU (exact: G entries are 0/1, accumulation f32).
    xr = jnp.dot(x, g_ref[...], preferred_element_type=jnp.float32)  # (tb, out_c)
    coef = tbl_ref[0:1, :]                                    # (1, out_c)
    y = xr * coef                # exact f32 multiply; coef==1.0 on passthrough lanes
    s = jnp.sin(y)               # one wide EUP pass
    c = jnp.cos(y)               # one wide EUP pass
    sin_m = tbl_ref[1:2, :] > 0.5                             # (1, out_c) masks,
    cos_m = tbl_ref[2:3, :] > 0.5                             # broadcast over rows
    o_ref[...] = jnp.where(sin_m, s, jnp.where(cos_m, c, y)).astype(o_ref.dtype)


def _freq_bands(n_freqs, log_scale):
    if log_scale:
        return 2.0 ** np.linspace(0.0, n_freqs - 1, n_freqs)
    return np.linspace(1.0, 2.0 ** (n_freqs - 1), n_freqs)


def _round_up(v, m):
    return (v + m - 1) // m * m


def _choose_row_tile(B, block_rows):
    """Balanced row tile: multiple of 8, <= block_rows, and an (even) >= 2
    number of roughly equal grid steps whenever the batch is big enough to
    split — so both v7x TensorCores get comparable work."""
    if B <= 8:
        return B                         # block equals full array dim -> legal
    n_tiles = 2 * max(1, -(-B // (2 * block_rows)))   # even tile count
    tb = _round_up(-(-B // n_tiles), 8)
    return min(_round_up(block_rows, 8), tb)


def embedding(x, n_freqs, log_scale=True, block_rows=2048):
    """Pallas TPU implementation of Embedding.forward.

    x: (B, in_channels) -> (B, in_channels * (2*n_freqs + 1))
    """
    B, C = x.shape
    n_parts = 2 * n_freqs + 1
    out_c = C * n_parts
    freqs = _freq_bands(n_freqs, log_scale)

    # Constant tables (host-side, tiny).
    g = np.zeros((C, out_c), dtype=np.float32)         # 0/1 replication one-hot
    for p in range(n_parts):
        for c in range(C):
            g[c, p * C + c] = 1.0
    tbl = np.zeros((3, out_c), dtype=np.float32)
    tbl[0, :] = 1.0                                     # passthrough coef
    for k in range(n_freqs):
        f = np.float32(freqs[k])
        tbl[0, (2 * k + 1) * C:(2 * k + 2) * C] = f     # sin part frequency
        tbl[0, (2 * k + 2) * C:(2 * k + 3) * C] = f     # cos part frequency
        tbl[1, (2 * k + 1) * C:(2 * k + 2) * C] = 1.0   # sin selector
        tbl[2, (2 * k + 2) * C:(2 * k + 3) * C] = 1.0   # cos selector

    tb = _choose_row_tile(B, block_rows)
    grid = (pl.cdiv(B, tb),)

    # Scoped-VMEM budget derived from the tile: double-buffered, 128-lane-padded
    # in/out blocks + elementwise temporaries + headroom for the small tables.
    lane_in = _round_up(C, 128)
    lane_out = _round_up(out_c, 128)
    tb8 = _round_up(tb, 8)
    est = 4 * tb8 * (2 * lane_in + 2 * lane_out + 5 * lane_out) + (1 << 20)
    vmem_limit = int(min(128 << 20, max(32 << 20, 2 * est)))

    return pl.pallas_call(
        _embed_kernel,
        out_shape=jax.ShapeDtypeStruct((B, out_c), x.dtype),
        grid=grid,
        in_specs=[
            pl.BlockSpec((tb, C), lambda i: (i, 0)),
            pl.BlockSpec((C, out_c), lambda i: (0, 0)),
            pl.BlockSpec((3, out_c), lambda i: (0, 0)),
        ],
        out_specs=pl.BlockSpec((tb, out_c), lambda i: (i, 0)),
        compiler_params=pltpu.CompilerParams(
            dimension_semantics=("parallel",),
            vmem_limit_bytes=vmem_limit,
        ),
    )(x, jnp.asarray(g), jnp.asarray(tbl))


def embedding_ref(x, n_freqs, log_scale=True):
    """Pure-JAX reference mirroring the PyTorch forward."""
    freqs = _freq_bands(n_freqs, log_scale)
    out = [x]
    for f in freqs:
        f32 = jnp.float32(f)
        out.append(jnp.sin(f32 * x))
        out.append(jnp.cos(f32 * x))
    return jnp.concatenate(out, axis=-1)


if __name__ == "__main__":
    # Small NeRF xyz embedding: in_channels=3, n_freqs=10 -> out_channels=63.
    B, C, n_freqs = 8, 3, 10
    x = jax.random.normal(jax.random.PRNGKey(0), (B, C), dtype=jnp.float32)

    out = jax.block_until_ready(embedding(x, n_freqs, log_scale=True))
    ref = embedding_ref(x, n_freqs, log_scale=True)
    assert out.shape == (B, C * (2 * n_freqs + 1)), out.shape
    np.testing.assert_allclose(np.asarray(out), np.asarray(ref),
                               rtol=1e-5, atol=1e-5)

    # log_scale=False branch (non-power-of-two frequencies).
    out_lin = jax.block_until_ready(embedding(x, n_freqs, log_scale=False))
    ref_lin = embedding_ref(x, n_freqs, log_scale=False)
    np.testing.assert_allclose(np.asarray(out_lin), np.asarray(ref_lin),
                               rtol=1e-4, atol=1e-4)

    # Multi-tile grid with a non-divisible batch (exercises balanced tiling,
    # cdiv grid, and boundary-row masking).
    B2 = 4609
    x2 = jax.random.normal(jax.random.PRNGKey(1), (B2, C), dtype=jnp.float32)
    out2 = jax.block_until_ready(embedding(x2, n_freqs))
    ref2 = embedding_ref(x2, n_freqs)
    assert out2.shape == (B2, C * (2 * n_freqs + 1)), out2.shape
    np.testing.assert_allclose(np.asarray(out2), np.asarray(ref2),
                               rtol=1e-4, atol=1e-4)

    print("KERNEL_OK")
</pallas_src>

<mosaic_0001>
module attributes {stable_mosaic.version = 11 : i64} {
  func.func @_embed_kernel(%arg0: i32, %arg1: memref<8x3xf32, #tpu.memory_space<vmem>>, %arg2: memref<3x63xf32, #tpu.memory_space<vmem>>, %arg3: memref<3x63xf32, #tpu.memory_space<vmem>>, %arg4: memref<8x63xf32, #tpu.memory_space<vmem>>) attributes {dimension_semantics = [#tpu.dimension_semantics<parallel>], iteration_bounds = array<i64: 1>, scalar_prefetch = 0 : i64, scratch_operands = 0 : i64, tpu.core_type = #tpu.core_type<tc>, window_params = [{transform_indices = @transform_0, window_bounds = array<i64: 8, 3>}, {pipeline_mode = #tpu.pipeline_mode<synchronous>, transform_indices = @transform_1, window_bounds = array<i64: 3, 63>}, {pipeline_mode = #tpu.pipeline_mode<synchronous>, transform_indices = @transform_2, window_bounds = array<i64: 3, 63>}, {transform_indices = @transform_3, window_bounds = array<i64: 8, 63>}]} {
    %c0 = arith.constant 0 : index
    %c0_0 = arith.constant 0 : index
    %0 = vector.load %arg1[%c0, %c0_0] : memref<8x3xf32, #tpu.memory_space<vmem>>, vector<8x3xf32>
    %c0_1 = arith.constant 0 : index
    %c0_2 = arith.constant 0 : index
    %1 = vector.load %arg2[%c0_1, %c0_2] : memref<3x63xf32, #tpu.memory_space<vmem>>, vector<3x63xf32>
    %cst = arith.constant dense<0.000000e+00> : vector<8x63xf32>
    %2 = tpu.matmul %0, %1, %cst {dimension_numbers = #tpu.dot_dimension_numbers<[1], [0], [0], [1], [0, 0, 1, 1], [], []>} : vector<8x3xf32>, vector<3x63xf32>, vector<8x63xf32> -> vector<8x63xf32>
    %c0_3 = arith.constant 0 : index
    %c0_4 = arith.constant 0 : index
    %3 = vector.load %arg3[%c0_3, %c0_4] : memref<3x63xf32, #tpu.memory_space<vmem>>, vector<1x63xf32>
    %4 = vector.broadcast %3 : vector<1x63xf32> to vector<8x63xf32>
    %5 = arith.mulf %2, %4 : vector<8x63xf32>
    %6 = math.sin %5 : vector<8x63xf32>
    %7 = math.cos %5 : vector<8x63xf32>
    %c1 = arith.constant 1 : index
    %c0_5 = arith.constant 0 : index
    %8 = vector.load %arg3[%c1, %c0_5] : memref<3x63xf32, #tpu.memory_space<vmem>>, vector<1x63xf32>
    %cst_6 = arith.constant 5.000000e-01 : f32
    %9 = vector.broadcast %cst_6 : f32 to vector<1x63xf32>
    %10 = arith.cmpf ogt, %8, %9 : vector<1x63xf32>
    %c2 = arith.constant 2 : index
    %c0_7 = arith.constant 0 : index
    %11 = vector.load %arg3[%c2, %c0_7] : memref<3x63xf32, #tpu.memory_space<vmem>>, vector<1x63xf32>
    %cst_8 = arith.constant 5.000000e-01 : f32
    %12 = vector.broadcast %cst_8 : f32 to vector<1x63xf32>
    %13 = arith.cmpf ogt, %11, %12 : vector<1x63xf32>
    %14 = vector.shape_cast %13 : vector<1x63xi1> to vector<1x63xi1>
    %15 = vector.broadcast %14 : vector<1x63xi1> to vector<8x63xi1>
    %16 = arith.select %15, %7, %5 : vector<8x63xi1>, vector<8x63xf32>
    %17 = vector.shape_cast %10 : vector<1x63xi1> to vector<1x63xi1>
    %18 = vector.broadcast %17 : vector<1x63xi1> to vector<8x63xi1>
    %19 = arith.select %18, %6, %16 : vector<8x63xi1>, vector<8x63xf32>
    %c0_9 = arith.constant 0 : index
    %c0_10 = arith.constant 0 : index
    %20 = vector.load %arg4[%c0_9, %c0_10] : memref<8x63xf32, #tpu.memory_space<vmem>>, vector<8x63xf32>
    tpu.vector_store %arg4[%c0_9, %c0_10], %19 {strides = array<i32>} : memref<8x63xf32, #tpu.memory_space<vmem>>, vector<8x63xf32>,
    return
  }
  func.func @transform_0(%arg0: i32) -> (i32, i32) {
    %c0_i32 = arith.constant 0 : i32
    %c0_i32_0 = arith.constant 0 : i32
    return %arg0, %c0_i32 : i32, i32
  }
  func.func @transform_1(%arg0: i32) -> (i32, i32) {
    %c0_i32 = arith.constant 0 : i32
    %c0_i32_0 = arith.constant 0 : i32
    %c0_i32_1 = arith.constant 0 : i32
    return %c0_i32, %c0_i32_0 : i32, i32
  }
  func.func @transform_2(%arg0: i32) -> (i32, i32) {
    %c0_i32 = arith.constant 0 : i32
    %c0_i32_0 = arith.constant 0 : i32
    %c0_i32_1 = arith.constant 0 : i32
    return %c0_i32, %c0_i32_0 : i32, i32
  }
  func.func @transform_3(%arg0: i32) -> (i32, i32) {
    %c0_i32 = arith.constant 0 : i32
    %c0_i32_0 = arith.constant 0 : i32
    return %arg0, %c0_i32 : i32, i32
  }
}

</mosaic_0001>

<bundles_post_ra>
// kernel: tpu_custom_call.1
= control target key start
LH: loop header
LB: loop body
LE: loop exit
PB: predicated region body
PF: predicated region fallthrough
CT: control target
= control target key end

     0   :  { %vm21_vm0 = vcmask 1042432   ;;  %v402_v2 = vmov 0.0   ;;  %vm403_vm1 = vmmov 0   ;;  %vm17_vm2 = vcmask 23552   ;;  %s482_s0 = inlined_call_operand.vmem [shape: f32[8,3], index: 0, kind: input, shape index: {}]   ;;  %s483_s1 = inlined_call_operand.vmem [shape: f32[3,63], index: 1, kind: input, shape index: {}]   ;;  %s484_s2 = inlined_call_operand.vmem [shape: f32[3,63], index: 2, kind: input, shape index: {}]   ;;  %s485_s3 = inlined_call_operand.hbm [shape: f32[8,63], index: 3, kind: output, shape index: {}]  }
   0x1   :  { %v16_v0 = vld [vmem:[%s483_s1] sm:$0x7]  ;;  %355 = vmatprep.subr.mxu0 %v402_v2  ;;  %357 = vmatprep.mubr.msk.f32.mxu0 %vm403_vm1, %v402_v2 }
   0x2   :  { %v15_v1 = vld [vmem:[%s482_s0] sm:$0xff] }
   0x3   :  { %8 = vsyncpa [#allocation3], 0  ;;  %356 = vmatpush3.msk.msra.mxu0 %vm21_vm0, %v16_v0  ;;  %v344_v3 = vld [vmem:[%s484_s2] ss:$0 sm:$0xff]  ;;  %v404_v18 = vmov 2102212464  }
   0x4   :  { %358 = vmatmul.mubr.msk.f32.vlgmr.msra.gmra.mrb[0].mxu0 %vm17_vm2, %v15_v1  ;;  %v405_v20 = vmov 920167782   ;;  %v406_v24 = vmov 1326507024   ;;  %v407_v26 = vmov 683565275  }
   0x5   :  { %v408_v28 = vmov 2475754826   ;;  %v409_v31 = vmov 2131351028  }
  0xd7   :  { %v91_v4 = vpop.f32.mrb[0].mxu0 }
  0xd8   :  { %v441_v5 = vmul.f32 %v344_v3, %v91_v4  ;;  %v359_v6 = vpop.f32.mrb[1].mxu0 }
  0xda   :  { %v104_v7 = vand.u32 2139095040, %v441_v5  ;;  %v101_v8 = vand.u32 2147483647, %v441_v5  ;;  %vm103_vm10 = vcmp.lt.s32.totalorder %v441_v5, 0 }
  0xdc   :  { %v105_v9 = vshrl.u32 %v104_v7, 23  ;;  %v108_v11 = vand.u32 8388607, %v101_v8  ;;  %vm102_vm11 = vcmp.le.f32.partialorder %v101_v8, 0.7853982  ;;  %v410_v8 = vmov 0  }
  0xde   :  { %v345_v10 = vadd.s32 4294967169, %v105_v9  ;;  %v109_v14 = vor.u32 8388608, %v108_v11 }
  0xe0   :  { %v111_v12 = vadd.s32 1, %v345_v10  ;;  %v149_v22 = vshll.u32 %v109_v14, 8 }
  0xe2   :  { %vm112_vm3 = vcmp.gt.s32.totalorder %v111_v12, 0 }
  0xe3   :  { %v113_v13 = vsel %vm112_vm3, %v111_v12, 0 }
  0xe4   :  { %v115_v15 = vand.u32 31, %v113_v13  ;;  %v114_v16 = vshrl.u32 %v113_v13, 5 }
  0xe6   :  { %v116_v17 = vsub.s32 32, %v115_v15  ;;  %v127_v19 = vshll.u32 %v404_v18, %v115_v15  ;;  %v130_v21 = vshll.u32 %v405_v20, %v115_v15  ;;  %v118_v27 = vshll.u32 %v407_v26, %v115_v15 }
  0xe7   :  { %v121_v30 = vshll.u32 %v408_v28, %v115_v15  ;;  %v124_v33 = vshll.u32 %v409_v31, %v115_v15  ;;  %vm136_vm4 = vcmp.lt.s32.totalorder %v114_v16, 4  ;;  %vm133_vm5 = vcmp.lt.s32.totalorder %v114_v16, 1 }
  0xe8   :  { %v128_v23 = vshrl.u32 %v405_v20, %v116_v17  ;;  %v131_v25 = vshrl.u32 %v406_v24, %v116_v17  ;;  %v119_v29 = vshrl.u32 %v408_v28, %v116_v17  ;;  %v122_v32 = vshrl.u32 %v409_v31, %v116_v17 }
  0xe9   :  { %v125_v34 = vshrl.u32 %v404_v18, %v116_v17  ;;  %v117_v38 = vshrl.u32 %v407_v26, %v116_v17  ;;  %vm134_vm6 = vcmp.lt.s32.totalorder %v114_v16, 2  ;;  %vm135_vm7 = vcmp.lt.s32.totalorder %v114_v16, 3  ;;  %v310_v26 = vld [vmem:[%s484_s2 + $0x2] sm:$0x1] }
  0xea   :  { %v129_v35 = vor.u32 %v128_v23, %v127_v19  ;;  %v132_v36 = vor.u32 %v131_v25, %v130_v21  ;;  %v120_v37 = vor.u32 %v119_v29, %v118_v27  ;;  %v123_v39 = vor.u32 %v122_v32, %v121_v30  ;;  %v308_v29 = vld [vmem:[%s484_s2 + $0x1] sm:$0x1]  ;;  %s411_s2 = smov [#allocation2]  }
  0xeb   :  { %v126_v40 = vor.u32 %v125_v34, %v124_v33  ;;  %vm311_vm12 = vcmp.gt.f32.partialorder %v310_v26, 0.5  ;;  %vm309_vm13 = vcmp.gt.f32.partialorder %v308_v29, 0.5  ;;  %s334_s20 = sshll.u32 %s411_s2, 4  ;;  %s335_s20 = int_to_ptr.vmem [resolvable:$true] %s334_s20 }
  0xec   :  { %v142_v41 = vsel %vm136_vm4, %v129_v35, 920167782  ;;  %v146_v42 = vsel %vm136_vm4, %v132_v36, 1326507024  ;;  %v141_v44 = vsel %vm133_vm5, %v120_v37, %v123_v39  ;;  %v137_v47 = vsel %vm133_vm5, %v117_v38, %v120_v37  ;;  %s378_s21 = scalar_lea.vmem %s335_s20, 128  ;;  %p383_p1 = scmp.lt.s32.totalorder %s335_s20, %s335_s20 }
  0xed   :  { %v138_v43 = vsel %vm136_vm4, %v126_v40, 2102212464  ;;  %v143_v45 = vsel %vm135_vm7, %v126_v40, %v142_v41  ;;  %v145_v46 = vsel %vm133_vm5, %v123_v39, %v126_v40  ;;  %v147_v50 = vsel %vm135_vm7, %v129_v35, %v146_v42  ;;  %p379_p0 = scmp.ne.s32.totalorder %s335_s20, %s378_s21  ;;  %p384_p2 = scmp.lt.s32.totalorder %s378_s21, %s378_s21 }
  0xee   :  { %v139_v48 = vsel %vm135_vm7, %v123_v39, %v138_v43  ;;  %v144_v49 = vsel %vm134_vm6, %v141_v44, %v143_v45  ;;  %v148_v51 = vsel %vm134_vm6, %v145_v46, %v147_v50  ;;  %v312_v32 = vsel %vm311_vm12, 1, %v410_v8 }
  0xef   :  { %v447_v52 = vmul.u32.u64.low %v149_v22, %v144_v49  ;;  %v448_v53 = vmul.u32.u64.high %v149_v22, %v144_v49, %v447_v52  ;;  %v450_v54 = vmul.u32.u64.low %v149_v22, %v148_v51  ;;  %v451_v55 = vmul.u32.u64.high %v149_v22, %v148_v51, %v450_v54  ;;  %p385_p3 = por %p384_p2, %p383_p1 }
  0xf0   :  { %v140_v56 = vsel %vm134_vm6, %v137_v47, %v139_v48  ;;  %v319_v36 = vsel %vm309_vm13, 1, %v410_v8  ;;  %vm193_vm5 = vweird.f32 %v441_v5  ;;  %vm326_vm7 = vcmask 515072  }
  0xf1   :  { %v159_v57 = vadd.s32 1, %v448_v53  ;;  %v156_v58 = vmul.u32 %v149_v22, %v140_v56  ;;  %vm158_vm8 = vc.u32 %v451_v55, %v447_v52  ;;  %v157_v7 = vadd.s32 %v447_v52, %v451_v55  ;;  %p386_p4 = pnand %p385_p3, %p379_p0 }
  0xf2   :  { %v313_v22 = vlaneseq }
  0xf3   :  { %v160_v59 = vsel %vm158_vm8, %v159_v57, %v448_v53 }
  0xf4   :  { %v161_v60 = vadd.s32 %v160_v59, %v156_v58  ;;  %v314_v27 = vshrl.u32 %v313_v22, 7 }
  0xf6   :  { %v162_v61 = vadd.s32 536870912, %v161_v60  ;;  %v315_v31 = vsub.s32 0, %v314_v27 }
  0xf8   :  { %v163_v62 = vshrl.u32 %v162_v61, 30  ;;  %v316_v35 = vrot.slane %v312_v32, %v315_v31  ;;  %v323_v40 = vrot.slane %v319_v36, %v315_v31 }
  0xfa   :  { %v164_v63 = vshll.u32 %v163_v62, 30  ;;  %v187_v20 = vsub.s32 4, %v163_v62  ;;  %vm317_vm0 = vcmp.eq.s32.totalorder %v316_v35, 1  ;;  %vm324_vm6 = vcmp.eq.s32.totalorder %v323_v40, 1 }
  0xfc   :  { %v165_v0 = vsub.s32 %v161_v60, %v164_v63  ;;  %v188_v24 = vsel %vm103_vm10, %v187_v20, %v163_v62 }
  0xfd   :  { %v190_v28 = vsel %vm102_vm11, 0, %v188_v24 }
  0xfe   :  { %v167_v1 = vsub.s32 0, %v165_v0  ;;  %v194_v30 = vadd.s32 3, %v190_v28  ;;  %v298_v34 = vand.u32 3, %v190_v28 }
 0x100   :  { %v346_v2 = vmin.u32 %v167_v1, %v165_v0  ;;  %v195_v33 = vand.u32 3, %v194_v30  ;;  %vm303_vm15 = vcmp.eq.s32.totalorder %v298_v34, 2  ;;  %vm300_vm2 = vcmp.eq.s32.totalorder %v298_v34, 0 }
 0x101   :  { %vm299_vm4 = vcmp.lt.s32.totalorder %v298_v34, 2 }
 0x102   :  { %v169_v3 = vclz %v346_v2  ;;  %vm200_vm14 = vcmp.eq.s32.totalorder %v195_v33, 2  ;;  %vm197_vm1 = vcmp.eq.s32.totalorder %v195_v33, 0  ;;  %vm196_vm3 = vcmp.lt.s32.totalorder %v195_v33, 2 }
 0x104   :  { %v347_v4 = vadd.s32 4294967294, %v169_v3 }
 0x106   :  { %vm348_vm9 = vcmp.lt.s32.totalorder %v347_v4, 0 }
 0x107   :  { %v172_v6 = vsel %vm348_vm9, 0, %v347_v4 }
 0x108   :  { %v173_v9 = vsub.s32 32, %v172_v6  ;;  %v177_v10 = vsub.s32 4294967266, %v172_v6  ;;  %v174_v11 = vshll.u32 %v165_v0, %v172_v6 }
 0x10a   :  { %v175_v12 = vshrl.u32 %v157_v7, %v173_v9  ;;  %v178_v13 = vadd.s32 127, %v177_v10 }
 0x10c   :  { %v176_v14 = vor.u32 %v175_v12, %v174_v11  ;;  %v179_v15 = vshll.u32 %v178_v13, 23 }
 0x10e   :  { %v180_v16 = vor.u32 4788187, %v179_v15  ;;  %v183_v18 = vcvt.s32.f32 %v176_v14 }
 0x110   :  { %v181_v17 = vand.u32 2147483647, %v180_v16 }
 0x112   :  { %v184_v19 = vmul.f32 %v183_v18, %v181_v17 }
 0x114   :  { %v185_v21 = vxor.u32 2147483648, %v184_v19 }
 0x116   :  { %v186_v23 = vsel %vm103_vm10, %v185_v21, %v184_v19 }
 0x117   :  { %v189_v25 = vsel %vm102_vm11, %v441_v5, %v186_v23 }
 0x118   :  { %374 = vcosq.f32 %v189_v25 }
 0x119   :  { %376 = vsinq.f32 %v189_v25 }
 0x122   :  { %v375_v37 = vpop.eup %374 }
 0x123   :  { %v377_v38 = vpop.eup %376  ;;  %v201_v39 = vxor.u32 2147483648, %v375_v37 }
 0x124   :  { %v198_v41 = vxor.u32 2147483648, %v377_v38 }
 0x125   :  { %v202_v42 = vsel %vm200_vm14, %v201_v39, %v377_v38  ;;  %v305_v43 = vsel %vm303_vm15, %v201_v39, %v377_v38 }
 0x126   :  { %v199_v44 = vsel %vm197_vm1, %v375_v37, %v198_v41  ;;  %v302_v45 = vsel %vm300_vm2, %v375_v37, %v198_v41 }
 0x127   :  { %v203_v46 = vsel %vm196_vm3, %v199_v44, %v202_v42  ;;  %v306_v47 = vsel %vm299_vm4, %v302_v45, %v305_v43 }
 0x128   :  { %v204_v48 = vsel %vm193_vm5, nan, %v203_v46  ;;  %v307_v49 = vsel %vm193_vm5, nan, %v306_v47 }
 0x129   :  { %v318_v50 = vsel %vm317_vm0, %v307_v49, %v441_v5 }
 0x12a   :  { %v325_v51 = vsel %vm324_vm6, %v204_v48, %v318_v50 }
 0x12b   :  { %327 = vst.msk [vmem:[#allocation2] sm:$0xff] %vm326_vm7, %v325_v51 }
 0x12c   :  { %389 = shalt.err (!%p386_p4)
}
 0x12d   :  { %s390_s24 = scalar_lea.hbm %s485_s3, 128 }
 0x12e   :  { %p391_p5 = scmp.ne.s32.totalorder %s485_s3, %s390_s24  ;;  %p394_p6 = scmp.lt.u32.totalorder %s390_s24, %s485_s3 }
 0x130   :  { %p396_p7 = pnand %p394_p6, %p391_p5 }
 0x132   :  { %399 = shalt.err (!%p396_p7)
}
 0x133   :  { %337 = dma.vmem_to_hbm [thread:$0]  %s335_s20, 128, %s485_s3, [#allocation3]  }
 0x134   :  { %400 = dma.done.wait [#allocation3], 128  }
 0x135   :  { %401 = vsyncadd [#allocation3], 4294967168 }
 0x136   :  { %341 = vsyncpa [#allocation3], 1 }

</bundles_post_ra>
